<compile_context>
chip_gen: v7x
topology: tpu7x:2x2x1
jax: 0.10.0
libtpu: 0.0.40
codegen_flags: <defaults>
</compile_context>

<pallas_src>
import functools

import jax
import jax.numpy as jnp
from jax.experimental import pallas as pl
from jax.experimental.pallas import tpu as pltpu

_LANES = 1024                       # lane-dense last dim (multiple of 128) -> unmasked vst
_MAX_TILE_ROWS = 1024               # 1024 x 1024 x 4 B = 4 MiB per f32 buffer
_VMEM_LIMIT_BYTES = 32 * 1024 * 1024  # in+out double-buffered (16 MiB live) fits comfortably


def _fake_quant_kernel(x_ref, o_ref, *, scale):
    # Base-class forward math (no clamp, so zero_point cancels): out = round(x/scale)*scale.
    x = x_ref[...].astype(jnp.float32)
    o_ref[...] = (jnp.round(x / scale) * scale).astype(o_ref.dtype)


def _round_up(v, m):
    return ((v + m - 1) // m) * m


def _pick_tile_rows(rows):
    """Pick a row-tile size: >=2 grid steps whenever legally splittable (v7x dual-TC),
    capped at _MAX_TILE_ROWS for VMEM."""
    if rows <= 8:
        return rows  # single full block (block dims == array dims, always legal)
    if rows <= 2 * _MAX_TILE_ROWS:
        return max(8, _round_up(pl.cdiv(rows, 2), 8))  # exactly 2 tiles (2nd may be partial)
    return _MAX_TILE_ROWS


def fake_quantize(x, scale, zero_point=0.0):
    """Fake-quantize `x` (any shape, float dtype): round(x/scale)*scale, same shape/dtype.

    zero_point cancels exactly in the base-class forward (no clamping), so it is unused.
    `scale` is baked in as a compile-time constant (one compiled kernel per distinct scale).
    """
    # TODO(synk): if a subclass clamps quant to [quant_min, quant_max], zero_point no longer
    # cancels and must be reinstated; the base class applies no clamp.
    del zero_point
    orig_shape = x.shape
    orig_dtype = x.dtype
    n = x.size
    scale = float(scale)

    flat = x.reshape(-1)                 # free (metadata-only) for contiguous layouts
    rows = n // _LANES
    tail_n = n - rows * _LANES

    kernel = functools.partial(_fake_quant_kernel, scale=scale)

    outs = []
    if rows > 0:
        bulk = flat if tail_n == 0 else flat[: rows * _LANES]
        bulk2d = bulk.reshape(rows, _LANES)

        tile_r = _pick_tile_rows(rows)
        grid = (pl.cdiv(rows, tile_r),)
        itemsize = jnp.dtype(orig_dtype).itemsize

        bulk_out = pl.pallas_call(
            kernel,
            out_shape=jax.ShapeDtypeStruct((rows, _LANES), orig_dtype),
            grid=grid,
            in_specs=[pl.BlockSpec((tile_r, _LANES), lambda i: (i, 0))],
            out_specs=pl.BlockSpec((tile_r, _LANES), lambda i: (i, 0)),
            compiler_params=pltpu.CompilerParams(
                dimension_semantics=("parallel",),
                vmem_limit_bytes=_VMEM_LIMIT_BYTES),
            cost_estimate=pl.CostEstimate(
                flops=3 * rows * _LANES,
                bytes_accessed=2 * rows * _LANES * itemsize,
                transcendentals=0),
        )(bulk2d)
        outs.append(bulk_out.reshape(-1))

    if tail_n:
        # <1024-element remainder handled with plain jnp so the bulk never pays a
        # pad / output-slice round trip through HBM.
        tail = flat[rows * _LANES:]
        tail_out = (jnp.round(tail.astype(jnp.float32) / scale) * scale).astype(orig_dtype)
        outs.append(tail_out)

    out_flat = outs[0] if len(outs) == 1 else jnp.concatenate(outs)
    return out_flat.reshape(orig_shape)


if __name__ == "__main__":
    key = jax.random.PRNGKey(0)
    # Small NCHW input consistent with a conv-style activation tensor (2*4*16*16 = 2048 elems,
    # a multiple of 1024, so it takes the zero-copy kernel path).
    x = jax.random.normal(key, (2, 4, 16, 16), dtype=jnp.float32)

    # Deterministic qparams for an 8-bit quantizer (synthetic, no checkpoint).
    bit = 8
    scale = 0.0625
    zero_point = 0.0
    # TODO(synk): observer(tensor) + update_qparams(tensor) only run under training/PTQ and are
    # NotImplementedError in the base class; qparams are fixed scalars here.

    out = fake_quantize(x, scale, zero_point)
    out = jax.block_until_ready(out)

    ref = jnp.round(x / scale) * scale
    assert out.shape == x.shape and out.dtype == x.dtype
    assert jnp.allclose(out, ref, atol=1e-6), "mismatch vs reference (bulk path)"

    # Extra sanity check: non-multiple-of-1024 size exercises the bulk + tail split path.
    x2 = jax.random.normal(jax.random.PRNGKey(1), (3, 7, 65), dtype=jnp.float32)  # 1365 elems
    out2 = jax.block_until_ready(fake_quantize(x2, scale, zero_point))
    ref2 = jnp.round(x2 / scale) * scale
    assert out2.shape == x2.shape and out2.dtype == x2.dtype
    assert jnp.allclose(out2, ref2, atol=1e-6), "mismatch vs reference (tail path)"

    print("KERNEL_OK")
</pallas_src>

<mosaic_0001>
module attributes {stable_mosaic.version = 11 : i64} {
  func.func @_fake_quant_kernel(%arg0: i32, %arg1: memref<2x1024xf32, #tpu.memory_space<vmem>>, %arg2: memref<2x1024xf32, #tpu.memory_space<vmem>>) attributes {dimension_semantics = [#tpu.dimension_semantics<parallel>], iteration_bounds = array<i64: 1>, scalar_prefetch = 0 : i64, scratch_operands = 0 : i64, tpu.core_type = #tpu.core_type<tc>, window_params = [{transform_indices = @transform_0, window_bounds = array<i64: 2, 1024>}, {transform_indices = @transform_1, window_bounds = array<i64: 2, 1024>}]} {
    %c0 = arith.constant 0 : index
    %c0_0 = arith.constant 0 : index
    %0 = vector.load %arg1[%c0, %c0_0] : memref<2x1024xf32, #tpu.memory_space<vmem>>, vector<2x1024xf32>
    %cst = arith.constant 6.250000e-02 : f32
    %1 = vector.broadcast %cst : f32 to vector<2x1024xf32>
    %2 = arith.divf %0, %1 : vector<2x1024xf32>
    %3 = math.roundeven %2 : vector<2x1024xf32>
    %cst_1 = arith.constant 6.250000e-02 : f32
    %4 = vector.broadcast %cst_1 : f32 to vector<2x1024xf32>
    %5 = arith.mulf %3, %4 : vector<2x1024xf32>
    %c0_2 = arith.constant 0 : index
    %c0_3 = arith.constant 0 : index
    %6 = vector.load %arg2[%c0_2, %c0_3] : memref<2x1024xf32, #tpu.memory_space<vmem>>, vector<2x1024xf32>
    tpu.vector_store %arg2[%c0_2, %c0_3], %5 {strides = array<i32>} : memref<2x1024xf32, #tpu.memory_space<vmem>>, vector<2x1024xf32>,
    return
  }
  func.func @transform_0(%arg0: i32) -> (i32, i32) {
    %c0_i32 = arith.constant 0 : i32
    %c0_i32_0 = arith.constant 0 : i32
    return %arg0, %c0_i32 : i32, i32
  }
  func.func @transform_1(%arg0: i32) -> (i32, i32) {
    %c0_i32 = arith.constant 0 : i32
    %c0_i32_0 = arith.constant 0 : i32
    return %arg0, %c0_i32 : i32, i32
  }
}

</mosaic_0001>

<bundles_post_ra>
// kernel: tpu_custom_call.1
= control target key start
LH: loop header
LB: loop body
LE: loop exit
PB: predicated region body
PF: predicated region fallthrough
CT: control target
= control target key end

     0   :  { %6 = vsyncpa [#allocation3], 0  ;;  %s135_s0 = inlined_call_operand.hbm [shape: f32[2,1024], index: 0, kind: input, shape index: {}]   ;;  %s136_s1 = inlined_call_operand.hbm [shape: f32[2,1024], index: 1, kind: output, shape index: {}]  }
   0x1   :  { %7 = vsyncpa [#allocation4], 0  ;;  %s99_s6 = smov [#allocation2]   ;;  %s51_s10 = scalar_lea.hbm %s135_s0, 256 }
   0x2   :  { %s14_s7 = sshll.u32 %s99_s6, 4  ;;  %p52_p0 = scmp.ne.s32.totalorder %s135_s0, %s51_s10  ;;  %s15_s7 = int_to_ptr.vmem [resolvable:$true] %s14_s7 }
   0x3   :  { %p55_p1 = scmp.lt.u32.totalorder %s51_s10, %s135_s0 }
   0x5   :  { %p57_p2 = pnand %p55_p1, %p52_p0 }
   0x7   :  { %60 = shalt.err (!%p57_p2)
}
   0x8   :  { %s61_s15 = scalar_lea.vmem %s15_s7, 256  ;;  %p66_p4 = scmp.lt.s32.totalorder %s15_s7, %s15_s7 }
   0x9   :  { %p62_p3 = scmp.ne.s32.totalorder %s15_s7, %s61_s15  ;;  %p67_p5 = scmp.lt.s32.totalorder %s61_s15, %s61_s15 }
   0xb   :  { %p68_p6 = por %p67_p5, %p66_p4 }
   0xd   :  { %p69_p7 = pnand %p68_p6, %p62_p3 }
   0xf   :  { %72 = shalt.err (!%p69_p7)
}
  0x10   :  { %17 = dma.hbm_to_vmem [thread:$0]  %s135_s0, 256, %s15_s7, [#allocation3]  }
  0x11   :  { %95 = dma.done.wait [#allocation3], 256  }
  0x12   :  { %96 = vsyncadd [#allocation3], 4294967040  ;;  %v21_v0 = vld [vmem:[#allocation2] sm:$0xff]  ;;  %v22_v1 = vld [vmem:[#allocation2 + $0x8] sm:$0xff]  ;;  %s100_s18 = smov [#allocation5]  }
  0x13   :  { %v24_v2 = vmul.f32 16.0, %v21_v0  ;;  %v25_v3 = vmul.f32 16.0, %v22_v1  ;;  %s38_s19 = sshll.u32 %s100_s18, 4  ;;  %s39_s19 = int_to_ptr.vmem [resolvable:$true] %s38_s19 }
  0x14   :  { %s73_s20 = scalar_lea.vmem %s39_s19, 256  ;;  %p78_p9 = scmp.lt.s32.totalorder %s39_s19, %s39_s19 }
  0x15   :  { %v47_v4 = vround.rtne.f32 %v24_v2  ;;  %v48_v5 = vround.rtne.f32 %v25_v3  ;;  %p74_p8 = scmp.ne.s32.totalorder %s39_s19, %s73_s20  ;;  %p79_p10 = scmp.lt.s32.totalorder %s73_s20, %s73_s20 }
  0x17   :  { %v28_v6 = vmul.f32 0.0625, %v47_v4  ;;  %v29_v7 = vmul.f32 0.0625, %v48_v5  ;;  %p80_p11 = por %p79_p10, %p78_p9 }
  0x19   :  { %30 = vst [vmem:[#allocation5] sm:$0xff] %v28_v6  ;;  %31 = vst [vmem:[#allocation5 + $0x8] sm:$0xff] %v29_v7  ;;  %p81_p12 = pnand %p80_p11, %p74_p8 }
  0x1b   :  { %84 = shalt.err (!%p81_p12)
}
  0x1c   :  { %s85_s22 = scalar_lea.hbm %s136_s1, 256 }
  0x1d   :  { %p86_p13 = scmp.ne.s32.totalorder %s136_s1, %s85_s22  ;;  %p89_p0 = scmp.lt.u32.totalorder %s85_s22, %s136_s1 }
  0x1f   :  { %p91_p1 = pnand %p89_p0, %p86_p13 }
  0x21   :  { %94 = shalt.err (!%p91_p1)
}
  0x22   :  { %41 = dma.vmem_to_hbm [thread:$0]  %s39_s19, 256, %s136_s1, [#allocation4]  }
  0x23   :  { %97 = dma.done.wait [#allocation4], 256  }
  0x24   :  { %98 = vsyncadd [#allocation4], 4294967040 }
  0x25   :  { %45 = vsyncpa [#allocation3], 1 }
  0x26   :  { %46 = vsyncpa [#allocation4], 1 }

</bundles_post_ra>
